<compile_context>
chip_gen: v7x
topology: tpu7x:2x2x1
jax: 0.10.0
libtpu: 0.0.40
codegen_flags: <defaults>
</compile_context>

<pallas_src>
import functools

import jax
import jax.numpy as jnp
from jax import lax
from jax.experimental import pallas as pl
from jax.experimental.pallas import tpu as pltpu


def _round_up(n: int, m: int) -> int:
    return -(-n // m) * m


def _mlp_kernel(*refs, depth: int, eps: float, negative_slope: float = 0.01):
    """Fused MLP forward for one batch tile, feature-major.

    refs (depth > 1):  x, w0_t, w_mid, b_hidden, w_last_t, b_last, out
    refs (depth == 1): x, w0_t,        b_hidden, w_last_t, b_last, out

      x        : (tile_b, C)        batch-major input tile
      w0_t     : (W, C)             first weight, pre-transposed
      w_mid    : (depth-1, W, W)    hidden weights 1..depth-1, pre-transposed
      b_hidden : (depth, W, 1)      hidden biases (broadcast along lanes)
      w_last_t : (1, W)             last weight, pre-transposed
      b_last   : (1, 1)
      out      : (1, tile_b)        lane-dense output row
    """
    out_ref = refs[-1]
    if depth > 1:
        x_ref, w0t_ref, wmid_ref, bh_ref, wlt_ref, bl_ref = refs[:-1]
    else:
        x_ref, w0t_ref, bh_ref, wlt_ref, bl_ref = refs[:-1]
        wmid_ref = None

    x = x_ref[...].astype(jnp.float32)  # (tile_b, C)

    # Layer 0 fused with the layout switch: (W, C) . (tile_b, C)^T -> (W, tile_b).
    # The single rhs transpose of the 32-wide x tile rides the otherwise-idle XLU.
    h = lax.dot_general(
        w0t_ref[...], x,
        dimension_numbers=(((1,), (1,)), ((), ())),
        preferred_element_type=jnp.float32,
    ) + bh_ref[0]
    h = jnp.where(h >= 0.0, h, negative_slope * h)

    # Hidden layers 1..depth-1: lane-dense (W, W) x (W, tile_b) MXU + VPU LeakyReLU.
    for i in range(depth - 1):
        h = jnp.dot(wmid_ref[i], h, preferred_element_type=jnp.float32) + bh_ref[i + 1]
        h = jnp.where(h >= 0.0, h, negative_slope * h)

    # Final layer (width -> 1): (1, W) x (W, tile_b) -> lane-dense (1, tile_b) row.
    z = jnp.dot(wlt_ref[...], h, preferred_element_type=jnp.float32) + bl_ref[...]

    # Softplus (numerically stable) then clamp(min=eps).
    z = jnp.maximum(z, 0.0) + jnp.log1p(jnp.exp(-jnp.abs(z)))
    out_ref[...] = jnp.maximum(z, eps).astype(out_ref.dtype)


def pack_params(weights, biases):
    """One-time (outside the hot path) repack into 5 kernel operands."""
    ws = [jnp.asarray(w, jnp.float32) for w in weights]
    bs = [jnp.asarray(b, jnp.float32).reshape(-1) for b in biases]
    depth = len(ws) - 1  # number of (Linear, LeakyReLU) hidden layers
    w0_t = ws[0].T                                              # (W, C)
    w_mid = jnp.stack([w.T for w in ws[1:-1]]) if depth > 1 else None  # (depth-1, W, W)
    b_hidden = jnp.stack([b[:, None] for b in bs[:-1]])         # (depth, W, 1)
    w_last_t = ws[-1].T                                         # (1, W)
    b_last = bs[-1].reshape(1, 1)                               # (1, 1)
    return (w0_t, w_mid, b_hidden, w_last_t, b_last)


def nonnegative_regressor(x, packed, *, eps=1e-10, max_tile_b=2048):
    """Run the fused NonNegativeRegressor kernel.

    x:      (B, C) float32
    packed: output of pack_params(weights, biases)
    returns (B, 1) float32, >= eps
    """
    w0_t, w_mid, b_hidden, w_last_t, b_last = packed
    B, C = x.shape
    depth = b_hidden.shape[0]

    # ---- batch tile selection -------------------------------------------------
    if B <= max_tile_b:
        # One grid step, block == full array: no padding, no per-step overhead.
        # Best for single-TC v5e/v6e; fine on v7x at these latency-bound sizes.
        tile_b = B
        B_pad = B
    else:
        # Multi-step: 128-aligned tiles (lane-dense output blocks, valid BlockSpec)
        # and an even step count so v7x's two TensorCores stay balanced; single-TC
        # chips just run a short serial loop over large tiles.
        steps = 2 * pl.cdiv(pl.cdiv(B, max_tile_b), 2)
        tile_b = _round_up(pl.cdiv(B, steps), 128)
        B_pad = _round_up(B, tile_b)
    if B_pad != B:
        # Stays inside the surrounding jit so XLA fuses the pad with neighbors.
        x = jnp.pad(x, ((0, B_pad - B), (0, 0)))
    grid = (B_pad // tile_b,)

    # ---- specs ----------------------------------------------------------------
    args = [x, w0_t]
    in_specs = [
        pl.BlockSpec((tile_b, C), lambda i: (i, 0)),
        pl.BlockSpec(w0_t.shape, lambda i: (0, 0)),
    ]
    if w_mid is not None:
        args.append(w_mid)
        in_specs.append(pl.BlockSpec(w_mid.shape, lambda i: (0, 0, 0)))
    args += [b_hidden, w_last_t, b_last]
    in_specs += [
        pl.BlockSpec(b_hidden.shape, lambda i: (0, 0, 0)),
        pl.BlockSpec(w_last_t.shape, lambda i: (0, 0)),
        pl.BlockSpec(b_last.shape, lambda i: (0, 0)),
    ]

    out_specs = pl.BlockSpec((1, tile_b), lambda i: (0, i))       # lane-dense row
    out_shape = jax.ShapeDtypeStruct((1, B_pad), jnp.float32)

    kernel = functools.partial(_mlp_kernel, depth=depth, eps=eps)
    out_row = pl.pallas_call(
        kernel,
        out_shape=out_shape,
        grid_spec=pltpu.PrefetchScalarGridSpec(
            num_scalar_prefetch=0,
            grid=grid,
            in_specs=in_specs,
            out_specs=out_specs,
        ),
        compiler_params=pltpu.CompilerParams(
            dimension_semantics=("parallel",),
        ),
    )(*args)

    # (1, B_pad) -> (B, 1); slice/reshape fuse inside the surrounding jit.
    return out_row[0, :B, None]


def _init_params(key, in_channels, width, depth):
    """Deterministic synthetic init (shapes match the nn.Linear stack)."""
    dims = [in_channels] + [width] * depth + [1]
    weights, biases = [], []
    for din, dout in zip(dims[:-1], dims[1:]):
        kw, kb, key = jax.random.split(key, 3)
        scale = 1.0 / jnp.sqrt(jnp.float32(din))
        w = jax.random.uniform(kw, (din, dout), jnp.float32, -scale, scale)
        b = jax.random.uniform(kb, (1, dout), jnp.float32, -scale, scale)
        weights.append(w)
        biases.append(b)
    return weights, biases


def _reference(x, weights, biases, eps, negative_slope=0.01):
    """Plain-JAX reference for correctness checking."""
    h = x
    n = len(weights)
    for i, (w, b) in enumerate(zip(weights, biases)):
        h = h @ w + b.reshape(1, -1)
        if i < n - 1:
            h = jnp.where(h >= 0.0, h, negative_slope * h)
        else:
            h = jnp.maximum(h, 0.0) + jnp.log1p(jnp.exp(-jnp.abs(h)))
    return jnp.maximum(h, eps)


if __name__ == "__main__":
    # Small shapes consistent with the module's forward: x is (batch, in_channels).
    batch, in_channels, width, depth = 16, 32, 32, 3
    eps = 1e-10

    key = jax.random.PRNGKey(0)
    kx, kp = jax.random.split(key)
    x = jax.random.normal(kx, (batch, in_channels), jnp.float32)
    weights, biases = _init_params(kp, in_channels, width, depth)

    packed = pack_params(weights, biases)                      # once, outside jit
    fwd = jax.jit(functools.partial(nonnegative_regressor, eps=eps))

    out = jax.block_until_ready(fwd(x, packed))
    ref = _reference(x, weights, biases, eps)
    assert out.shape == (batch, 1)
    assert bool(jnp.all(out >= eps))
    assert jnp.allclose(out, ref, rtol=1e-5, atol=1e-5)

    # batch=1030: single grid step, no padding.  batch=5000: even 128-aligned
    # multi-tile path (4 steps of 1280, padded rows discarded).
    for batch2 in (1030, 5000):
        x2 = jax.random.normal(jax.random.PRNGKey(1), (batch2, in_channels),
                               jnp.float32)
        out2 = jax.block_until_ready(fwd(x2, packed))
        ref2 = _reference(x2, weights, biases, eps)
        assert out2.shape == (batch2, 1)
        assert bool(jnp.all(out2 >= eps))
        assert jnp.allclose(out2, ref2, rtol=1e-5, atol=1e-5)

    print("KERNEL_OK")
</pallas_src>

<mosaic_0001>
module attributes {stable_mosaic.version = 11 : i64} {
  func.func @_mlp_kernel(%arg0: i32, %arg1: memref<16x32xf32, #tpu.memory_space<vmem>>, %arg2: memref<32x32xf32, #tpu.memory_space<vmem>>, %arg3: memref<2x32x32xf32, #tpu.memory_space<vmem>>, %arg4: memref<3x32x1xf32, #tpu.memory_space<vmem>>, %arg5: memref<1x32xf32, #tpu.memory_space<vmem>>, %arg6: memref<1x1xf32, #tpu.memory_space<vmem>>, %arg7: memref<1x16xf32, #tpu.memory_space<vmem>>) attributes {dimension_semantics = [#tpu.dimension_semantics<parallel>], iteration_bounds = array<i64: 1>, scalar_prefetch = 0 : i64, scratch_operands = 0 : i64, tpu.core_type = #tpu.core_type<tc>, window_params = [{transform_indices = @transform_0, window_bounds = array<i64: 16, 32>}, {pipeline_mode = #tpu.pipeline_mode<synchronous>, transform_indices = @transform_1, window_bounds = array<i64: 32, 32>}, {pipeline_mode = #tpu.pipeline_mode<synchronous>, transform_indices = @transform_2, window_bounds = array<i64: 2, 32, 32>}, {pipeline_mode = #tpu.pipeline_mode<synchronous>, transform_indices = @transform_3, window_bounds = array<i64: 3, 32, 1>}, {pipeline_mode = #tpu.pipeline_mode<synchronous>, transform_indices = @transform_4, window_bounds = array<i64: 1, 32>}, {pipeline_mode = #tpu.pipeline_mode<synchronous>, transform_indices = @transform_5, window_bounds = array<i64: 1, 1>}, {transform_indices = @transform_6, window_bounds = array<i64: 1, 16>}]} {
    %c0 = arith.constant 0 : index
    %c0_0 = arith.constant 0 : index
    %0 = vector.load %arg1[%c0, %c0_0] : memref<16x32xf32, #tpu.memory_space<vmem>>, vector<16x32xf32>
    %c0_1 = arith.constant 0 : index
    %c0_2 = arith.constant 0 : index
    %1 = vector.load %arg2[%c0_1, %c0_2] : memref<32x32xf32, #tpu.memory_space<vmem>>, vector<32x32xf32>
    %cst = arith.constant dense<0.000000e+00> : vector<32x16xf32>
    %2 = tpu.matmul %1, %0, %cst {dimension_numbers = #tpu.dot_dimension_numbers<[1], [1], [0], [0], [0, 0, 1, 0], [], []>} : vector<32x32xf32>, vector<16x32xf32>, vector<32x16xf32> -> vector<32x16xf32>
    %c0_3 = arith.constant 0 : index
    %c0_4 = arith.constant 0 : index
    %c0_5 = arith.constant 0 : index
    %3 = vector.load %arg4[%c0_3, %c0_4, %c0_5] : memref<3x32x1xf32, #tpu.memory_space<vmem>>, vector<1x32x1xf32>
    %4 = vector.shape_cast %3 : vector<1x32x1xf32> to vector<32x1xf32>
    %5 = vector.broadcast %4 : vector<32x1xf32> to vector<32x16xf32>
    %6 = arith.addf %2, %5 : vector<32x16xf32>
    %cst_6 = arith.constant 0.000000e+00 : f32
    %7 = vector.broadcast %cst_6 : f32 to vector<32x16xf32>
    %8 = arith.cmpf oge, %6, %7 : vector<32x16xf32>
    %cst_7 = arith.constant 0.00999999977 : f32
    %9 = vector.broadcast %cst_7 : f32 to vector<32x16xf32>
    %10 = arith.mulf %9, %6 : vector<32x16xf32>
    %11 = arith.select %8, %6, %10 : vector<32x16xi1>, vector<32x16xf32>
    %c0_8 = arith.constant 0 : index
    %c0_9 = arith.constant 0 : index
    %c0_10 = arith.constant 0 : index
    %12 = vector.load %arg3[%c0_8, %c0_9, %c0_10] : memref<2x32x32xf32, #tpu.memory_space<vmem>>, vector<1x32x32xf32>
    %13 = vector.shape_cast %12 : vector<1x32x32xf32> to vector<32x32xf32>
    %cst_11 = arith.constant dense<0.000000e+00> : vector<32x16xf32>
    %14 = tpu.matmul %13, %11, %cst_11 {dimension_numbers = #tpu.dot_dimension_numbers<[1], [0], [0], [1], [0, 0, 1, 1], [], []>} : vector<32x32xf32>, vector<32x16xf32>, vector<32x16xf32> -> vector<32x16xf32>
    %c1 = arith.constant 1 : index
    %c0_12 = arith.constant 0 : index
    %c0_13 = arith.constant 0 : index
    %15 = vector.load %arg4[%c1, %c0_12, %c0_13] : memref<3x32x1xf32, #tpu.memory_space<vmem>>, vector<1x32x1xf32>
    %16 = vector.shape_cast %15 : vector<1x32x1xf32> to vector<32x1xf32>
    %17 = vector.broadcast %16 : vector<32x1xf32> to vector<32x16xf32>
    %18 = arith.addf %14, %17 : vector<32x16xf32>
    %cst_14 = arith.constant 0.000000e+00 : f32
    %19 = vector.broadcast %cst_14 : f32 to vector<32x16xf32>
    %20 = arith.cmpf oge, %18, %19 : vector<32x16xf32>
    %cst_15 = arith.constant 0.00999999977 : f32
    %21 = vector.broadcast %cst_15 : f32 to vector<32x16xf32>
    %22 = arith.mulf %21, %18 : vector<32x16xf32>
    %23 = arith.select %20, %18, %22 : vector<32x16xi1>, vector<32x16xf32>
    %c1_16 = arith.constant 1 : index
    %c0_17 = arith.constant 0 : index
    %c0_18 = arith.constant 0 : index
    %24 = vector.load %arg3[%c1_16, %c0_17, %c0_18] : memref<2x32x32xf32, #tpu.memory_space<vmem>>, vector<1x32x32xf32>
    %25 = vector.shape_cast %24 : vector<1x32x32xf32> to vector<32x32xf32>
    %cst_19 = arith.constant dense<0.000000e+00> : vector<32x16xf32>
    %26 = tpu.matmul %25, %23, %cst_19 {dimension_numbers = #tpu.dot_dimension_numbers<[1], [0], [0], [1], [0, 0, 1, 1], [], []>} : vector<32x32xf32>, vector<32x16xf32>, vector<32x16xf32> -> vector<32x16xf32>
    %c2 = arith.constant 2 : index
    %c0_20 = arith.constant 0 : index
    %c0_21 = arith.constant 0 : index
    %27 = vector.load %arg4[%c2, %c0_20, %c0_21] : memref<3x32x1xf32, #tpu.memory_space<vmem>>, vector<1x32x1xf32>
    %28 = vector.shape_cast %27 : vector<1x32x1xf32> to vector<32x1xf32>
    %29 = vector.broadcast %28 : vector<32x1xf32> to vector<32x16xf32>
    %30 = arith.addf %26, %29 : vector<32x16xf32>
    %cst_22 = arith.constant 0.000000e+00 : f32
    %31 = vector.broadcast %cst_22 : f32 to vector<32x16xf32>
    %32 = arith.cmpf oge, %30, %31 : vector<32x16xf32>
    %cst_23 = arith.constant 0.00999999977 : f32
    %33 = vector.broadcast %cst_23 : f32 to vector<32x16xf32>
    %34 = arith.mulf %33, %30 : vector<32x16xf32>
    %35 = arith.select %32, %30, %34 : vector<32x16xi1>, vector<32x16xf32>
    %c0_24 = arith.constant 0 : index
    %c0_25 = arith.constant 0 : index
    %36 = vector.load %arg5[%c0_24, %c0_25] : memref<1x32xf32, #tpu.memory_space<vmem>>, vector<1x32xf32>
    %cst_26 = arith.constant dense<0.000000e+00> : vector<1x16xf32>
    %37 = tpu.matmul %36, %35, %cst_26 {dimension_numbers = #tpu.dot_dimension_numbers<[1], [0], [0], [1], [0, 0, 1, 1], [], []>} : vector<1x32xf32>, vector<32x16xf32>, vector<1x16xf32> -> vector<1x16xf32>
    %c0_27 = arith.constant 0 : index
    %c0_28 = arith.constant 0 : index
    %38 = vector.load %arg6[%c0_27, %c0_28] : memref<1x1xf32, #tpu.memory_space<vmem>>, vector<1x1xf32>
    %39 = vector.broadcast %38 : vector<1x1xf32> to vector<1x16xf32>
    %40 = arith.addf %37, %39 : vector<1x16xf32>
    %cst_29 = arith.constant 0.000000e+00 : f32
    %41 = vector.broadcast %cst_29 : f32 to vector<1x16xf32>
    %42 = arith.maximumf %40, %41 : vector<1x16xf32>
    %43 = math.absf %40 : vector<1x16xf32>
    %cst_30 = arith.constant 0.000000e+00 : f32
    %44 = vector.broadcast %cst_30 : f32 to vector<1x16xf32>
    %45 = arith.subf %44, %43 : vector<1x16xf32>
    %46 = math.exp %45 : vector<1x16xf32>
    %47 = math.log1p %46 : vector<1x16xf32>
    %48 = arith.addf %42, %47 : vector<1x16xf32>
    %cst_31 = arith.constant 1.000000e-10 : f32
    %49 = vector.broadcast %cst_31 : f32 to vector<1x16xf32>
    %50 = arith.maximumf %48, %49 : vector<1x16xf32>
    %c0_32 = arith.constant 0 : index
    %c0_33 = arith.constant 0 : index
    %51 = vector.load %arg7[%c0_32, %c0_33] : memref<1x16xf32, #tpu.memory_space<vmem>>, vector<1x16xf32>
    tpu.vector_store %arg7[%c0_32, %c0_33], %50 {strides = array<i32>} : memref<1x16xf32, #tpu.memory_space<vmem>>, vector<1x16xf32>,
    return
  }
  func.func @transform_0(%arg0: i32) -> (i32, i32) {
    %c0_i32 = arith.constant 0 : i32
    %c0_i32_0 = arith.constant 0 : i32
    return %arg0, %c0_i32 : i32, i32
  }
  func.func @transform_1(%arg0: i32) -> (i32, i32) {
    %c0_i32 = arith.constant 0 : i32
    %c0_i32_0 = arith.constant 0 : i32
    %c0_i32_1 = arith.constant 0 : i32
    return %c0_i32, %c0_i32_0 : i32, i32
  }
  func.func @transform_2(%arg0: i32) -> (i32, i32, i32) {
    %c0_i32 = arith.constant 0 : i32
    %c0_i32_0 = arith.constant 0 : i32
    %c0_i32_1 = arith.constant 0 : i32
    %c0_i32_2 = arith.constant 0 : i32
    return %c0_i32, %c0_i32_0, %c0_i32_1 : i32, i32, i32
  }
  func.func @transform_3(%arg0: i32) -> (i32, i32, i32) {
    %c0_i32 = arith.constant 0 : i32
    %c0_i32_0 = arith.constant 0 : i32
    %c0_i32_1 = arith.constant 0 : i32
    %c0_i32_2 = arith.constant 0 : i32
    return %c0_i32, %c0_i32_0, %c0_i32_1 : i32, i32, i32
  }
  func.func @transform_4(%arg0: i32) -> (i32, i32) {
    %c0_i32 = arith.constant 0 : i32
    %c0_i32_0 = arith.constant 0 : i32
    %c0_i32_1 = arith.constant 0 : i32
    return %c0_i32, %c0_i32_0 : i32, i32
  }
  func.func @transform_5(%arg0: i32) -> (i32, i32) {
    %c0_i32 = arith.constant 0 : i32
    %c0_i32_0 = arith.constant 0 : i32
    %c0_i32_1 = arith.constant 0 : i32
    return %c0_i32, %c0_i32_0 : i32, i32
  }
  func.func @transform_6(%arg0: i32) -> (i32, i32) {
    %c0_i32 = arith.constant 0 : i32
    %c0_i32_0 = arith.constant 0 : i32
    return %c0_i32, %arg0 : i32, i32
  }
}

</mosaic_0001>

<bundles_post_ra>
// kernel: nonnegative_regressor.1
= control target key start
LH: loop header
LB: loop body
LE: loop exit
PB: predicated region body
PF: predicated region fallthrough
CT: control target
= control target key end

     0   :  { %s933_s0 = inlined_call_operand.hbm [shape: f32[16,32], index: 0, kind: input, shape index: {}]   ;;  %s934_s1 = inlined_call_operand.vmem [shape: f32[32,32], index: 1, kind: input, shape index: {}]   ;;  %s935_s2 = inlined_call_operand.vmem [shape: f32[2,32,32], index: 2, kind: input, shape index: {}]   ;;  %s936_s3 = inlined_call_operand.vmem [shape: f32[3,32,1], index: 3, kind: input, shape index: {}]   ;;  %s937_s4 = inlined_call_operand.vmem [shape: f32[1,32], index: 4, kind: input, shape index: {}]   ;;  %s938_s5 = inlined_call_operand.<no memory space> [shape: f32[1,1], index: 5, kind: input, shape index: {}]   ;;  %s939_s6 = inlined_call_operand.hbm [shape: f32[1,16], index: 6, kind: output, shape index: {}]  }
   0x1   :  { %v11_v0 = vstv %s938_s5 }
   0x2   :  { %12 = vst [vmem:[#allocation2] sm:$0x1] %v11_v0 }
   0x3   :  { %13 = vsyncpa [#allocation4], 0 }
   0x4   :  { %14 = vsyncpa [#allocation5], 0  ;;  %s773_s23 = smov [#allocation3]   ;;  %s725_s27 = scalar_lea.hbm %s933_s0, 256 }
   0x5   :  { %s20_s24 = sshll.u32 %s773_s23, 4  ;;  %p726_p0 = scmp.ne.s32.totalorder %s933_s0, %s725_s27  ;;  %s21_s24 = int_to_ptr.vmem [resolvable:$true] %s20_s24 }
   0x6   :  { %p729_p1 = scmp.lt.u32.totalorder %s725_s27, %s933_s0 }
   0x8   :  { %p731_p2 = pnand %p729_p1, %p726_p0 }
   0xa   :  { %734 = shalt.err (!%p731_p2)
}
   0xb   :  { %s735_s5 = scalar_lea.vmem %s21_s24, 256  ;;  %p740_p4 = scmp.lt.s32.totalorder %s21_s24, %s21_s24 }
   0xc   :  { %p736_p3 = scmp.ne.s32.totalorder %s21_s24, %s735_s5  ;;  %p741_p5 = scmp.lt.s32.totalorder %s735_s5, %s735_s5 }
   0xe   :  { %p742_p6 = por %p741_p5, %p740_p4 }
  0x10   :  { %p743_p7 = pnand %p742_p6, %p736_p3 }
  0x12   :  { %746 = shalt.err (!%p743_p7)
}
  0x13   :  { %s774_s8 = smov 128   ;;  %s775_s9 = smov 8  }
  0x14   :  { %26 = dma.hbm_to_vmem [thread:$0]  %s933_s0, 256, %s21_s24, [#allocation4], %s774_s8, %s774_s8, %s775_s9  }
  0x15   :  { %769 = dma.done.wait [#allocation4], 256  }
  0x16   :  { %770 = vsyncadd [#allocation4], 4294967040  ;;  %v776_v1 = vmov 0   ;;  %vm70_vm0 = vcmask 261120   ;;  %v40_v2 = vld [vmem:[#allocation3] sm:$0xff]  ;;  %v41_v3 = vld [vmem:[#allocation3 + $0x8] sm:$0xff] }
  0x17   :  { %719 = vset.pattern.permute.xlu0 %v776_v1  ;;  %720 = vset.pattern.permute.xlu1 %v776_v1  ;;  %vm684_vm1 = vmpackc.low %vm70_vm0, %vm70_vm0  ;;  %v42_v4 = vld [vmem:[%s934_s1] sm:$0xff]  ;;  %v683_v5 = vpack.c.bf16 %v41_v3, %v40_v2  ;;  %v48_v7 = vld [vmem:[%s936_s3 + $0x10] sm:$0xff]  ;;  %vm778_vm10 = vmmov 0  }
  0x18   :  { %638 = vmatprep.mubr.msk.f32.mxu0 %vm70_vm0, %v42_v4  ;;  %v46_v6 = vld [vmem:[%s936_s3] sm:$0xff]  ;;  %v47_v8 = vld [vmem:[%s936_s3 + $0x8] sm:$0xff]  ;;  %62 = vperm.xlu1 %720, %v48_v7   ;;  %v49_v9 = vld [vmem:[%s936_s3 + $0x18] sm:$0xff] }
  0x19   :  { %685 = vmatprep.subr.msk.bf16.mxu0 %vm684_vm1, %v683_v5  ;;  %52 = vperm.xlu0 %719, %v46_v6   ;;  %v43_v10 = vld [vmem:[%s934_s1 + $0x8] sm:$0xff]  ;;  %v586_v11 = vld [vmem:[%s936_s3 + $0x20] sm:$0xff]  ;;  %v44_v12 = vld [vmem:[%s934_s1 + $0x10] sm:$0xff] }
  0x1a   :  { %688 = vmatpush3.bf16.xpose.msk.msra.mxu0 %vm684_vm1, %v683_v5  ;;  %v587_v13 = vld [vmem:[%s936_s3 + $0x28] sm:$0xff]  ;;  %v45_v14 = vld [vmem:[%s934_s1 + $0x18] sm:$0xff]  ;;  %v588_v15 = vld [vmem:[%s936_s3 + $0x30] sm:$0xff] }
  0x1b   :  { %v589_v16 = vld [vmem:[%s936_s3 + $0x38] sm:$0xff]  ;;  %v598_v17 = vld [vmem:[%s936_s3 + $0x40] sm:$0xff]  ;;  %v599_v18 = vld [vmem:[%s936_s3 + $0x48] sm:$0xff] }
  0x1c   :  { %67 = vperm.xlu1 %720, %v49_v9   ;;  %v600_v19 = vld [vmem:[%s936_s3 + $0x50] sm:$0xff]  ;;  %v601_v20 = vld [vmem:[%s936_s3 + $0x58] sm:$0xff]  ;;  %v464_v21 = vld [vmem:[#allocation2] sm:$0x1] }
  0x1d   :  { %57 = vperm.xlu0 %719, %v47_v8   ;;  %v186_v22 = vld [vmem:[%s935_s2] sm:$0xff]  ;;  %v187_v45 = vld [vmem:[%s935_s2 + $0x8] sm:$0xff]  ;;  %v188_v46 = vld [vmem:[%s935_s2 + $0x10] sm:$0xff] }
  0x1e   :  { %652 = vmatprep.mubr.msk.f32.mxu1 %vm70_vm0, %v186_v22  ;;  %v189_v47 = vld [vmem:[%s935_s2 + $0x18] sm:$0xff]  ;;  %v594_v48 = vld [vmem:[%s935_s2 + $0x20] sm:$0xff]  ;;  %v595_v7 = vld [vmem:[%s935_s2 + $0x28] sm:$0xff] }
  0x1f   :  { %v596_v8 = vld [vmem:[%s935_s2 + $0x30] sm:$0xff]  ;;  %v597_v9 = vld [vmem:[%s935_s2 + $0x38] sm:$0xff] }
  0x20   :  { %202 = vperm.xlu1 %720, %v587_v13  }
  0x21   :  { %639 = vmatmul.mubr.msk.f32.vlgmr.msra.gmra.mrb[0].mxu0 %vm70_vm0, %v43_v10  ;;  %197 = vperm.xlu0 %719, %v586_v11   ;;  %v777_v10 = vmov 0.0|0.0   ;;  %v779_v11 = vmov 0.0  }
  0x22   :  { %641 = vmatprep.mubr.msk.f32.mxu0 %vm70_vm0, %v44_v12 }
  0x24   :  { %212 = vperm.xlu1 %720, %v589_v16  }
  0x25   :  { %642 = vmatmul.mubr.msk.f32.gmra.mrb[2].mxu0 %vm70_vm0, %v45_v14  ;;  %207 = vperm.xlu0 %719, %v588_v15  }
  0x26   :  { %666 = vmatprep.mubr.msk.f32.mxu0 %vm70_vm0, %v594_v48 }
  0x28   :  { %341 = vperm.xlu1 %720, %v599_v18  }
  0x29   :  { %336 = vperm.xlu0 %719, %v598_v17  }
  0x2c   :  { %351 = vperm.xlu1 %720, %v601_v20  }
  0x2d   :  { %346 = vperm.xlu0 %719, %v600_v19  }
  0x31   :  { %467 = vperm.xlu0 %719, %v464_v21  }
  0x97   :  { %v63_v24 = vpop.permute.xlu1 %62 }
  0x98   :  { %v53_v23 = vpop.permute.xlu0 %52 }
  0x9b   :  { %v68_v31 = vpop.permute.xlu1 %67 }
  0x9c   :  { %v58_v25 = vpop.permute.xlu0 %57 }
  0x9f   :  { %v203_v49 = vpop.permute.xlu1 %202 }
  0xa0   :  { %v198_v50 = vpop.permute.xlu0 %197 }
  0xa3   :  { %v213_v56 = vpop.permute.xlu1 %212 }
  0xa4   :  { %v208_v59 = vpop.permute.xlu0 %207 }
  0xa7   :  { %v342_v12 = vpop.permute.xlu1 %341 }
  0xa8   :  { %v337_v13 = vpop.permute.xlu0 %336 }
  0xab   :  { %v352_v19 = vpop.permute.xlu1 %351 }
  0xac   :  { %v347_v22 = vpop.permute.xlu0 %346 }
  0xf4   :  { %v640_v26 = vpop.f32.mrb[0].mxu0 }
  0xf5   :  { %v161_v27 = vadd.f32 %v640_v26, %v58_v25  ;;  %v155_v28 = vpop.f32.mrb[1].mxu0 }
  0xf6   :  { %v156_v29 = vadd.f32 %v155_v28, %v53_v23 }
  0xf7   :  { %v179_v30 = vmul.f32 0.01, %v161_v27  ;;  %vm175_vm2 = vcmp.ge.f32.partialorder %v161_v27, 0.0 }
  0xf8   :  { %v178_v32 = vmul.f32 0.01, %v156_v29  ;;  %v643_v33 = vpop.f32.mrb[2].mxu0  ;;  %vm174_vm3 = vcmp.ge.f32.partialorder %v156_v29, 0.0 }
  0xf9   :  { %v171_v34 = vadd.f32 %v643_v33, %v68_v31  ;;  %v165_v35 = vpop.f32.mrb[3].mxu0  ;;  %v183_v36 = vsel %vm175_vm2, %v161_v27, %v179_v30 }
  0xfa   :  { %v166_v37 = vadd.f32 %v165_v35, %v63_v24  ;;  %v182_v38 = vsel %vm174_vm3, %v156_v29, %v178_v32  ;;  %v470_v35 = vlaneseq }
  0xfb   :  { %vm177_vm4 = vcmp.ge.f32.partialorder %v171_v34, 0.0  ;;  %v181_v39 = vmul.f32 0.01, %v171_v34  ;;  %v689_v40 = vpack.c.bf16 %v183_v36, %v182_v38  ;;  %v468_v38 = vpop.permute.xlu0 %467 }
  0xfc   :  { %vm176_vm5 = vcmp.ge.f32.partialorder %v166_v37, 0.0  ;;  %v180_v41 = vmul.f32 0.01, %v166_v37  ;;  %v471_v36 = vshrl.u32 %v470_v35, 7 }
  0xfd   :  { %690 = vmatprep.subr.bf16.mxu1 %v689_v40  ;;  %v185_v42 = vsel %vm177_vm4, %v171_v34, %v181_v39  ;;  %v463_v34 = vld [vmem:[%s937_s4] sm:$0x1]  ;;  %s780_s4 = smov [#allocation6]  }
  0xfe   :  { %692 = vmatpush3.bf16.msra.mxu1 %v689_v40  ;;  %v184_v43 = vsel %vm176_vm5, %v166_v37, %v180_v41  ;;  %v472_v37 = vsub.s32 0, %v471_v36  ;;  %s571_s5 = sshll.u32 %s780_s4, 4  ;;  %s572_s5 = int_to_ptr.vmem [resolvable:$true] %s571_s5 }
  0xff   :  { %v693_v44 = vpack.c.bf16 %v185_v42, %v184_v43  ;;  %s747_s8 = scalar_lea.vmem %s572_s5, 16  ;;  %s751_s9 = scalar_lea.vmem %s572_s5, 32 }
 0x100   :  { %v473_v39 = vrot.slane %v468_v38, %v472_v37  ;;  %p748_p8 = scmp.ne.s32.totalorder %s572_s5, %s747_s8  ;;  %p752_p9 = scmp.lt.s32.totalorder %s572_s5, %s572_s5 }
 0x101   :  { %694 = vmatprep.subr.bf16.mxu1 %v693_v44  ;;  %p753_p10 = scmp.lt.s32.totalorder %s751_s9, %s747_s8 }
 0x102   :  { %696 = vmatpush3.bf16.msra.mxu1 %v693_v44 }
 0x103   :  { %705 = vmatprep.subr.bf16.mxu1 %v777_v10  ;;  %p754_p11 = por %p753_p10, %p752_p9 }
 0x105   :  { %653 = vmatmul.mubr.msk.f32.vlgmr.msra.gmra.mrb[0].mxu1 %vm70_vm0, %v187_v45  ;;  %p755_p12 = pnand %p754_p11, %p748_p8 }
 0x106   :  { %655 = vmatprep.mubr.msk.f32.mxu1 %vm70_vm0, %v188_v46 }
 0x109   :  { %656 = vmatmul.mubr.msk.f32.gmra.mrb[2].mxu1 %vm70_vm0, %v189_v47 }
 0x10a   :  { %680 = vmatprep.mubr.msk.f32.mxu1 %vm778_vm10, %v779_v11 }
 0x1d8   :  { %v654_v51 = vpop.f32.mrb[0].mxu1 }
 0x1d9   :  { %v299_v52 = vadd.f32 %v654_v51, %v203_v49  ;;  %v293_v53 = vpop.f32.mrb[1].mxu1 }
 0x1da   :  { %v294_v54 = vadd.f32 %v293_v53, %v198_v50 }
 0x1db   :  { %vm313_vm6 = vcmp.ge.f32.partialorder %v299_v52, 0.0  ;;  %v317_v55 = vmul.f32 0.01, %v299_v52 }
 0x1dc   :  { %vm312_vm7 = vcmp.ge.f32.partialorder %v294_v54, 0.0  ;;  %v316_v57 = vmul.f32 0.01, %v294_v54  ;;  %v657_v58 = vpop.f32.mrb[2].mxu1 }
 0x1dd   :  { %v309_v60 = vadd.f32 %v657_v58, %v213_v56  ;;  %v303_v61 = vpop.f32.mrb[3].mxu1  ;;  %v321_v62 = vsel %vm313_vm6, %v299_v52, %v317_v55 }
 0x1de   :  { %v304_v63 = vadd.f32 %v303_v61, %v208_v59  ;;  %v320_v0 = vsel %vm312_vm7, %v294_v54, %v316_v57 }
 0x1df   :  { %vm315_vm8 = vcmp.ge.f32.partialorder %v309_v60, 0.0  ;;  %v319_v1 = vmul.f32 0.01, %v309_v60  ;;  %v697_v2 = vpack.c.bf16 %v321_v62, %v320_v0 }
 0x1e0   :  { %vm314_vm9 = vcmp.ge.f32.partialorder %v304_v63, 0.0  ;;  %v318_v3 = vmul.f32 0.01, %v304_v63 }
 0x1e1   :  { %698 = vmatprep.subr.bf16.mxu0 %v697_v2  ;;  %v323_v4 = vsel %vm315_vm8, %v309_v60, %v319_v1 }
 0x1e2   :  { %700 = vmatpush3.bf16.msra.mxu0 %v697_v2  ;;  %v322_v5 = vsel %vm314_vm9, %v304_v63, %v318_v3 }
 0x1e3   :  { %v701_v6 = vpack.c.bf16 %v323_v4, %v322_v5 }
 0x1e5   :  { %702 = vmatprep.subr.bf16.mxu0 %v701_v6 }
 0x1e6   :  { %704 = vmatpush3.bf16.msra.mxu0 %v701_v6 }
 0x1e9   :  { %667 = vmatmul.mubr.msk.f32.vlgmr.msra.gmra.mrb[4].mxu0 %vm70_vm0, %v595_v7 }
 0x1ea   :  { %669 = vmatprep.mubr.msk.f32.mxu0 %vm70_vm0, %v596_v8 }
 0x1ed   :  { %670 = vmatmul.mubr.msk.f32.gmra.mrb[6].mxu0 %vm70_vm0, %v597_v9 }
 0x2bc   :  { %v668_v14 = vpop.f32.mrb[4].mxu0 }
 0x2bd   :  { %v438_v15 = vadd.f32 %v668_v14, %v342_v12  ;;  %v432_v16 = vpop.f32.mrb[5].mxu0 }
 0x2be   :  { %v433_v17 = vadd.f32 %v432_v16, %v337_v13 }
 0x2bf   :  { %vm452_vm11 = vcmp.ge.f32.partialorder %v438_v15, 0.0  ;;  %v456_v18 = vmul.f32 0.01, %v438_v15 }
 0x2c0   :  { %vm451_vm12 = vcmp.ge.f32.partialorder %v433_v17, 0.0  ;;  %v455_v20 = vmul.f32 0.01, %v433_v17  ;;  %v671_v21 = vpop.f32.mrb[6].mxu0 }
 0x2c1   :  { %v460_v23 = vsel %vm452_vm11, %v438_v15, %v456_v18  ;;  %v448_v24 = vadd.f32 %v671_v21, %v352_v19  ;;  %v442_v25 = vpop.f32.mrb[7].mxu0 }
 0x2c2   :  { %v459_v26 = vsel %vm451_vm12, %v433_v17, %v455_v20  ;;  %v443_v27 = vadd.f32 %v442_v25, %v347_v22 }
 0x2c3   :  { %v706_v28 = vpack.c.bf16 %v460_v23, %v459_v26  ;;  %vm454_vm13 = vcmp.ge.f32.partialorder %v448_v24, 0.0  ;;  %v458_v29 = vmul.f32 0.01, %v448_v24 }
 0x2c4   :  { %vm453_vm14 = vcmp.ge.f32.partialorder %v443_v27, 0.0  ;;  %v457_v30 = vmul.f32 0.01, %v443_v27 }
 0x2c5   :  { %v462_v31 = vsel %vm454_vm13, %v448_v24, %v458_v29  ;;  %707 = vmatpush3.bf16.msra.mxu1 %v706_v28 }
 0x2c6   :  { %v461_v32 = vsel %vm453_vm14, %v443_v27, %v457_v30  ;;  %708 = vmatprep.subr.bf16.mxu1 %v777_v10 }
 0x2c7   :  { %v709_v33 = vpack.c.bf16 %v462_v31, %v461_v32 }
 0x2c9   :  { %710 = vmatpush3.bf16.msra.mxu1 %v709_v33 }
 0x2cc   :  { %681 = vmatmul.mubr.msk.f32.vlgmr.msra.gmra.mrb[4].mxu1 %vm70_vm0, %v463_v34  ;;  %vm563_vm0 = vcmask 122880  }
 0x39f   :  { %v543_v40 = vpop.f32.mrb[4].mxu1 }
 0x3a0   :  { %v544_v41 = vadd.f32 %v543_v40, %v473_v39  ;;  %v682_v42 = vpop.f32.mrb[5].mxu1 }
 0x3a2   :  { %v548_v43 = vand.u32 2147483647, %v544_v41  ;;  %v547_v54 = vmax.f32 %v544_v41, 0.0 }
 0x3a4   :  { %v549_v44 = vsub.f32 0.0, %v548_v43 }
 0x3a6   :  { %v550_v45 = vmul.f32 1.442695, %v549_v44 }
 0x3a8   :  { %721 = vpow2.f32 %v550_v45 }
 0x3b2   :  { %v722_v46 = vpop.eup %721 }
 0x3b3   :  { %v552_v47 = vadd.f32 1.0, %v722_v46  ;;  %v555_v48 = vmul.f32 -0.5, %v722_v46  ;;  %v558_v50 = vand.u32 2147483647, %v722_v46 }
 0x3b5   :  { %723 = vlog2.f32 %v552_v47  ;;  %v556_v49 = vadd.f32 1.0, %v555_v48  ;;  %vm559_vm15 = vcmp.lt.f32.partialorder %v558_v50, 0.0004427343 }
 0x3b7   :  { %v557_v53 = vmul.f32 %v722_v46, %v556_v49 }
 0x3bf   :  { %v724_v51 = vpop.eup %723 }
 0x3c0   :  { %v554_v52 = vmul.f32 0.6931472, %v724_v51 }
 0x3c2   :  { %v560_v55 = vsel %vm559_vm15, %v557_v53, %v554_v52 }
 0x3c3   :  { %v561_v56 = vadd.f32 %v560_v55, %v547_v54 }
 0x3c5   :  { %v562_v57 = vmax.f32 %v561_v56, 1e-10 }
 0x3c7   :  { %564 = vst.msk [vmem:[#allocation6] sm:$0x1] %vm563_vm0, %v562_v57 }
 0x3c8   :  { %758 = shalt.err (!%p755_p12)
}
 0x3c9   :  { %s759_s12 = scalar_lea.hbm %s939_s6, 16 }
 0x3ca   :  { %p760_p13 = scmp.ne.s32.totalorder %s939_s6, %s759_s12  ;;  %p763_p0 = scmp.lt.u32.totalorder %s759_s12, %s939_s6 }
 0x3cc   :  { %p765_p1 = pnand %p763_p0, %p760_p13 }
 0x3ce   :  { %768 = shalt.err (!%p765_p1)
}
 0x3cf   :  { %574 = dma.vmem_to_hbm [thread:$0]  %s572_s5, 16, %s939_s6, [#allocation5]  }
 0x3d0   :  { %771 = dma.done.wait [#allocation5], 16  }
 0x3d1   :  { %772 = vsyncadd [#allocation5], 4294967280 }
 0x3d2   :  { %578 = vsyncpa [#allocation4], 1 }
 0x3d3   :  { %579 = vsyncpa [#allocation5], 1 }

</bundles_post_ra>
